<compile_context>
chip_gen: v5e
topology: v5e:2x2
jax: 0.10.0
libtpu: 0.0.40
codegen_flags: <defaults>
</compile_context>

<pallas_src>
import functools

import jax
import jax.numpy as jnp
from jax import lax
from jax.experimental import pallas as pl
from jax.experimental.pallas import tpu as pltpu


def _round_up(x, m):
    return ((x + m - 1) // m) * m


def _cdiv(a, b):
    return -(-a // b)


def _vmem_capacity_bytes():
    # Generation-aware VMEM capacity (v5e/v6e: 128 MiB, v7x: 64 MiB).  Falls
    # back to the smallest (v7x) value if the query is unavailable.
    try:
        info = pltpu.get_tpu_info()
        cap = int(getattr(info, "vmem_capacity_bytes", 0))
        if cap > 0:
            return cap
    except Exception:
        pass
    return 64 * 2**20


# --------------------- resident table + one-hot MXU gather ------------------


def _resident_onehot_kernel(eff_ref, table_ref, out_ref):
    # eff_ref:   VMEM (block_b, 1) int32     effective class ids for this slab
    # table_ref: VMEM (n_rows, dim)          whole embedding table (resident)
    # out_ref:   VMEM (block_b, dim)         output slab for this grid step
    block_b = out_ref.shape[0]
    n_rows = table_ref.shape[0]

    eff = eff_ref[...]                                            # (block_b, 1)
    row_ids = lax.broadcasted_iota(jnp.int32, (block_b, n_rows), 1)
    onehot = (row_ids == eff).astype(table_ref.dtype)             # (block_b, n_rows)

    # One-hot gather on the MXU.  HIGHEST precision so 1.0 * x reproduces f32
    # table entries (bf16 tables are exact with f32 accumulation anyway).
    gathered = jnp.dot(
        onehot,
        table_ref[...],
        preferred_element_type=jnp.float32,
        precision=lax.Precision.HIGHEST,
    )
    out_ref[...] = gathered.astype(out_ref.dtype)


def _class_embedding_resident(eff_pad, embed_table, block_b, out_dtype,
                              vmem_limit, parallel):
    B_pad = eff_pad.shape[0]
    n_rows, dim = embed_table.shape
    num_blocks = B_pad // block_b
    itemsize = jnp.dtype(embed_table.dtype).itemsize
    sublane = max(8, 32 // itemsize)

    eff2d = eff_pad.reshape(B_pad, 1)

    # Single-buffer the resident table when it is large: the constant
    # index_map only ever needs one copy, and double-buffering a big table
    # would blow v7x's 64 MiB VMEM.  (Tiny tables keep the default pipeline
    # mode; the extra copy is harmless.)
    table_tile_bytes = _round_up(n_rows, sublane) * _round_up(dim, 128) * itemsize
    table_kwargs = {}
    if table_tile_bytes > 4 * 2**20:
        table_kwargs["pipeline_mode"] = pl.Buffered(1)
    table_spec = pl.BlockSpec((n_rows, dim), lambda i: (0, 0), **table_kwargs)

    cost = pl.CostEstimate(
        flops=2 * B_pad * n_rows * dim,
        transcendentals=0,
        bytes_accessed=n_rows * dim * itemsize + B_pad * dim * itemsize + B_pad * 4,
    )

    return pl.pallas_call(
        _resident_onehot_kernel,
        out_shape=jax.ShapeDtypeStruct((B_pad, dim), out_dtype),
        grid=(num_blocks,),
        in_specs=[
            pl.BlockSpec((block_b, 1), lambda i: (i, 0)),
            table_spec,
        ],
        out_specs=pl.BlockSpec((block_b, dim), lambda i: (i, 0)),
        compiler_params=pltpu.CompilerParams(
            # Megacore only helps when output traffic dominates; otherwise each
            # TensorCore would re-DMA its own copy of the table.
            dimension_semantics=(("parallel",) if parallel else ("arbitrary",)),
            vmem_limit_bytes=vmem_limit,
        ),
        cost_estimate=cost,
    )(eff2d, embed_table)


# ----------------------- manual DMA row-gather path -------------------------


def _dma_gather_kernel(eff_ref, table_hbm, out_ref, buf, sem, *, block_b, window):
    # eff_ref:   SMEM (B_pad,) int32       scalar-prefetched effective ids
    # table_hbm: HBM  (n_rows, dim)        table left in place; rows fetched on demand
    # out_ref:   VMEM (block_b, dim)       output slab for this grid step
    # buf:       VMEM (block_b, dim)       gather landing buffer
    # sem:       DMA semaphores (window,)  rotating in-flight window
    base = pl.program_id(0) * block_b

    def row_copy(r, row):
        return pltpu.make_async_copy(
            table_hbm.at[pl.ds(row, 1), :],
            buf.at[pl.ds(r, 1), :],
            sem.at[r % window],
        )

    # Prime the window with the first `window` row fetches.
    @pl.loop(0, min(window, block_b))
    def _(r):
        row_copy(r, eff_ref[base + r]).start()

    # Steady state: retire row r, immediately refill its slot with row r+window.
    @pl.loop(0, block_b)
    def _(r):
        row_copy(r, 0).wait()          # same transfer size; src row irrelevant

        @pl.when(r + window < block_b)
        def _():
            nxt = r + window
            row_copy(nxt, eff_ref[base + nxt]).start()

    out_ref[...] = buf[...]


def _class_embedding_dma_gather(eff_pad, embed_table, block_b, out_dtype,
                                vmem_limit, window=8):
    B_pad = eff_pad.shape[0]
    n_rows, dim = embed_table.shape
    num_blocks = B_pad // block_b
    itemsize = jnp.dtype(embed_table.dtype).itemsize

    grid_spec = pltpu.PrefetchScalarGridSpec(
        num_scalar_prefetch=1,
        grid=(num_blocks,),
        in_specs=[pl.BlockSpec(memory_space=pl.ANY)],      # table stays in HBM
        out_specs=pl.BlockSpec((block_b, dim), lambda i, eff: (i, 0)),
        scratch_shapes=[
            pltpu.VMEM((block_b, dim), embed_table.dtype),
            pltpu.SemaphoreType.DMA((window,)),
        ],
    )

    cost = pl.CostEstimate(
        flops=0,
        transcendentals=0,
        bytes_accessed=2 * B_pad * dim * itemsize + B_pad * 4,
    )

    return pl.pallas_call(
        functools.partial(_dma_gather_kernel, block_b=block_b, window=window),
        out_shape=jax.ShapeDtypeStruct((B_pad, dim), out_dtype),
        grid_spec=grid_spec,
        compiler_params=pltpu.CompilerParams(
            dimension_semantics=("parallel",),
            vmem_limit_bytes=vmem_limit,
        ),
        cost_estimate=cost,
    )(eff_pad, embed_table)


# --------------------------------- wrapper ----------------------------------


def class_embedding_forward(condition, embed_table, n_classes, is_uncond=None,
                            block_b=None, force_path=None):
    """Pallas implementation of ClassEmbedding.forward.

    condition:   int (B,)
    embed_table: (n_classes + 1, dim) embedding weight
    is_uncond:   optional bool (B,)
    returns:     (B, dim) in embed_table's dtype
    """
    B = condition.shape[0]
    n_rows, dim = embed_table.shape
    dtype = embed_table.dtype
    itemsize = jnp.dtype(dtype).itemsize

    # Effective class id per row (scalar select in the wrapper, no gather).
    eff = condition.astype(jnp.int32)
    if is_uncond is not None:
        eff = jnp.where(is_uncond, jnp.int32(n_classes), eff)
    # Clamp: no runtime bounds check on VMEM / DMA faults on OOB.  (Silently
    # remaps out-of-range ids instead of erroring like nn.Embedding.)
    eff = jnp.clip(eff, 0, n_rows - 1)

    # Output rows per grid step: (8,128)-aligned slabs, capped at 512 rows,
    # sized to minimize last-block padding (e.g. B=130 -> block_b=72, not 256).
    sublane = max(8, 32 // itemsize)
    cap = 512
    if block_b is None:
        if B <= cap:
            block_b = _round_up(B, sublane)
        else:
            block_b = _round_up(_cdiv(B, _cdiv(B, cap)), sublane)
    block_b = max(sublane, _round_up(block_b, sublane))
    B_pad = _round_up(B, block_b)
    eff_pad = jnp.pad(eff, (0, B_pad - B)) if B_pad != B else eff

    # ---- path choice: resident one-hot gather vs manual DMA row gather -----
    lane_dim = _round_up(dim, 128)
    n_rows_lane = _round_up(n_rows, 128)
    table_tile_bytes = _round_up(n_rows, sublane) * lane_dim * itemsize
    out_bytes = B_pad * lane_dim * itemsize

    # Working set of the resident path: table (single- or double-buffered),
    # output & index double buffers, one-hot + iota intermediates, slack.
    table_resident_bytes = (
        table_tile_bytes if table_tile_bytes > 4 * 2**20 else 2 * table_tile_bytes
    )
    resident_need = (
        table_resident_bytes
        + 2 * block_b * lane_dim * itemsize
        + 2 * block_b * 128 * 4
        + block_b * n_rows_lane * (4 + itemsize)
        + (2 << 20)
    )
    vmem_cap = _vmem_capacity_bytes()
    resident_budget = vmem_cap - 16 * 2**20            # pipeline headroom
    fits_resident = resident_need <= resident_budget
    # B-aware: if only a small fraction of the table is actually needed, a row
    # gather beats reading the whole table from HBM (biggest win on v5e).
    worth_resident = table_tile_bytes <= 4 * out_bytes

    if force_path is None:
        use_resident = fits_resident and worth_resident
    else:
        use_resident = force_path == "resident"

    if use_resident:
        vmem_limit = int(min(max(resident_need, 32 * 2**20), vmem_cap))
        parallel = out_bytes >= table_tile_bytes
        out = _class_embedding_resident(eff_pad, embed_table, block_b, dtype,
                                        vmem_limit, parallel)
    else:
        gather_need = 3 * block_b * lane_dim * itemsize + (2 << 20)
        vmem_limit = int(min(max(gather_need, 16 * 2**20), vmem_cap))
        out = _class_embedding_dma_gather(eff_pad, embed_table, block_b, dtype,
                                          vmem_limit)

    return out[:B] if B_pad != B else out


if __name__ == "__main__":
    n_classes = 10
    dim = 128
    B = 8

    key = jax.random.PRNGKey(0)
    k_table, k_cond, k_unc = jax.random.split(key, 3)

    # Deterministic "parameters": nn.Embedding weight of shape (n_classes+1, dim).
    embed_table = jax.random.normal(k_table, (n_classes + 1, dim), dtype=jnp.float32)

    # Example inputs.
    condition = jax.random.randint(k_cond, (B,), 0, n_classes, dtype=jnp.int32)
    is_uncond = jax.random.bernoulli(k_unc, 0.5, (B,))

    eff = jnp.where(is_uncond, jnp.full_like(condition, n_classes), condition)
    ref = embed_table[eff]

    # Default path (resident one-hot MXU gather at this size).
    out = jax.block_until_ready(
        class_embedding_forward(condition, embed_table, n_classes, is_uncond)
    )
    assert out.shape == (B, dim)
    assert jnp.allclose(out, ref, rtol=1e-5, atol=1e-5), "mismatch vs reference"

    # is_uncond=None path.
    out2 = jax.block_until_ready(
        class_embedding_forward(condition, embed_table, n_classes, None)
    )
    assert jnp.allclose(out2, embed_table[condition], rtol=1e-5, atol=1e-5), \
        "mismatch (no uncond) vs reference"

    # Batch size that needs padding (exercises padded-index rows being sliced off).
    cond3 = jax.random.randint(jax.random.PRNGKey(1), (37,), 0, n_classes,
                               dtype=jnp.int32)
    unc3 = jax.random.bernoulli(jax.random.PRNGKey(2), 0.5, (37,))
    out3 = jax.block_until_ready(
        class_embedding_forward(cond3, embed_table, n_classes, unc3)
    )
    eff3 = jnp.where(unc3, jnp.full_like(cond3, n_classes), cond3)
    assert out3.shape == (37, dim)
    assert jnp.allclose(out3, embed_table[eff3], rtol=1e-5, atol=1e-5), \
        "mismatch (padded batch) vs reference"

    # Manual-DMA row-gather path (used for huge tables / tiny batches).
    out4 = jax.block_until_ready(
        class_embedding_forward(condition, embed_table, n_classes, is_uncond,
                                force_path="gather")
    )
    assert jnp.allclose(out4, ref), "mismatch (DMA gather path) vs reference"

    print("KERNEL_OK")
</pallas_src>

<mosaic_0001>
module attributes {stable_mosaic.version = 11 : i64} {
  func.func @_resident_onehot_kernel(%arg0: i32, %arg1: memref<8x1xi32, #tpu.memory_space<vmem>>, %arg2: memref<11x128xf32, #tpu.memory_space<vmem>>, %arg3: memref<8x128xf32, #tpu.memory_space<vmem>>) attributes {dimension_semantics = [#tpu.dimension_semantics<arbitrary>], iteration_bounds = array<i64: 1>, scalar_prefetch = 0 : i64, scratch_operands = 0 : i64, tpu.core_type = #tpu.core_type<tc>, window_params = [{transform_indices = @transform_0, window_bounds = array<i64: 8, 1>}, {pipeline_mode = #tpu.pipeline_mode<synchronous>, transform_indices = @transform_1, window_bounds = array<i64: 11, 128>}, {transform_indices = @transform_2, window_bounds = array<i64: 8, 128>}]} {
    %c0 = arith.constant 0 : index
    %c0_0 = arith.constant 0 : index
    %0 = vector.load %arg1[%c0, %c0_0] : memref<8x1xi32, #tpu.memory_space<vmem>>, vector<8x1xi32>
    %1 = tpu.iota {dimensions = array<i32: 1>} : vector<8x11xi32>
    %2 = vector.broadcast %0 : vector<8x1xi32> to vector<8x11xi32>
    %3 = arith.cmpi eq, %1, %2 : vector<8x11xi32>
    %4 = arith.extui %3 : vector<8x11xi1> to vector<8x11xi32>
    %5 = arith.sitofp %4 : vector<8x11xi32> to vector<8x11xf32>
    %c0_1 = arith.constant 0 : index
    %c0_2 = arith.constant 0 : index
    %6 = vector.load %arg2[%c0_1, %c0_2] : memref<11x128xf32, #tpu.memory_space<vmem>>, vector<11x128xf32>
    %cst = arith.constant dense<0.000000e+00> : vector<8x128xf32>
    %7 = tpu.matmul %5, %6, %cst {dimension_numbers = #tpu.dot_dimension_numbers<[1], [0], [0], [1], [0, 0, 1, 1], [], []>, precision = #tpu.contract_precision<fp32>} : vector<8x11xf32>, vector<11x128xf32>, vector<8x128xf32> -> vector<8x128xf32>
    %c0_3 = arith.constant 0 : index
    %c0_4 = arith.constant 0 : index
    %8 = vector.load %arg3[%c0_3, %c0_4] : memref<8x128xf32, #tpu.memory_space<vmem>>, vector<8x128xf32>
    tpu.vector_store %arg3[%c0_3, %c0_4], %7 {strides = array<i32>} : memref<8x128xf32, #tpu.memory_space<vmem>>, vector<8x128xf32>,
    return
  }
  func.func @transform_0(%arg0: i32) -> (i32, i32) {
    %c0_i32 = arith.constant 0 : i32
    %c0_i32_0 = arith.constant 0 : i32
    return %arg0, %c0_i32 : i32, i32
  }
  func.func @transform_1(%arg0: i32) -> (i32, i32) {
    %c0_i32 = arith.constant 0 : i32
    %c0_i32_0 = arith.constant 0 : i32
    %c0_i32_1 = arith.constant 0 : i32
    return %c0_i32, %c0_i32_0 : i32, i32
  }
  func.func @transform_2(%arg0: i32) -> (i32, i32) {
    %c0_i32 = arith.constant 0 : i32
    %c0_i32_0 = arith.constant 0 : i32
    return %arg0, %c0_i32 : i32, i32
  }
}

</mosaic_0001>

<bundles_post_ra>
// kernel: tpu_custom_call.1
= control target key start
LH: loop header
LB: loop body
LE: loop exit
PB: predicated region body
PF: predicated region fallthrough
CT: control target
= control target key end

     0   :  { %7 = vsyncpa [#allocation3], 0  ;;  %s317_s0 = inlined_call_operand.vmem [shape: s32[8,1], index: 0, kind: input, shape index: {}]   ;;  %s318_s1 = inlined_call_operand.hbm [shape: f32[11,128], index: 1, kind: input, shape index: {}]   ;;  %s319_s2 = inlined_call_operand.hbm [shape: f32[8,128], index: 2, kind: output, shape index: {}]  }
   0x1   :  { %8 = vsyncpa [#allocation4], 0  ;;  %s15_s11 = sshll.u32 %s318_s1, 4  ;;  %s287_s12 = smov [#allocation2]   ;;  %s16_s11 = int_to_ptr.hbm [resolvable:$true] %s15_s11 }
   0x2   :  { %s17_s13 = sshll.u32 %s287_s12, 4  ;;  %s288_s14 = smov 128   ;;  %s18_s13 = int_to_ptr.vmem [resolvable:$true] %s17_s13 }
   0x3   :  { %s289_s15 = smov 8  }
   0x4   :  { %23 = dma.hbm_to_vmem [thread:$0]  %s16_s11, 256, %s18_s13, [#allocation3], %s288_s14, %s288_s14, %s289_s15  }
   0x5   :  { %283 = dma.done.wait [#allocation3], 256  }
   0x6   :  { %284 = vsyncadd [#allocation3], 4294967040  ;;  %v290_v0 = vmov 0   ;;  %vm43_vm0 = vcmask 1042432   ;;  %v28_v1 = vld [vmem:[%s317_s0] sm:$0xff]  ;;  %v29_v15 = vlaneseq  ;;  %vm39_vm1 = vcmask 89088  }
   0x7   :  { %234 = vset.pattern.permute.xlu0 %v290_v0  ;;  %v38_v2 = vld [vmem:[#allocation2 + $0x8] sm:$0x7]  ;;  %v37_v9 = vld [vmem:[#allocation2] sm:$0xff]  ;;  %v291_v18 = vmov 0.0   ;;  %s292_s0 = smov [#allocation5]   ;;  %s214_s20 = sshll.u32 %s319_s2, 4  ;;  %s215_s20 = int_to_ptr.hbm [resolvable:$true] %s214_s20 }
   0x8   :  { %32 = vperm.xlu0 %234, %v28_v1   ;;  %v45_v3 = vsel %vm43_vm0, %v38_v2, 0  ;;  %v63_v10 = vand.u32 4294901760, %v37_v9  ;;  %v30_v16 = vand.u32 127, %v29_v15  ;;  %s212_s1 = sshll.u32 %s292_s0, 4  ;;  %s213_s1 = int_to_ptr.vmem [resolvable:$true] %s212_s1 }
   0x9   :  { %v61_v4 = vand.u32 4294901760, %v45_v3 }
   0xa   :  { %v95_v11 = vsub.f32 %v37_v9, %v63_v10 }
   0xb   :  { %v89_v5 = vsub.f32 %v45_v3, %v61_v4  ;;  %146 = vmatpush.msra.mxu3 %v61_v4  ;;  %62 = vmatpush.msra.mxu0 %v61_v4 }
   0xc   :  { %v96_v12 = vand.u32 4294901760, %v95_v11 }
   0xd   :  { %v90_v6 = vand.u32 4294901760, %v89_v5  ;;  %121 = vmatpush.msra.mxu2 %v89_v5  ;;  %148 = vmatpush.msra.mxu3 %v63_v10 }
   0xe   :  { %64 = vmatpush.msra.mxu0 %v63_v10  ;;  %v97_v13 = vsub.f32 %v95_v11, %v96_v12 }
   0xf   :  { %v91_v7 = vsub.f32 %v89_v5, %v90_v6  ;;  %124 = vmatpush.msra.mxu2 %v95_v11 }
  0x10   :  { %173 = vmatpush.msrb.mxu0 %v90_v6  ;;  %v98_v14 = vand.u32 4294901760, %v97_v13 }
  0x11   :  { %v92_v8 = vand.u32 4294901760, %v91_v7 }
  0x12   :  { %177 = vmatpush.msrb.mxu0 %v96_v12 }
  0x13   :  { %93 = vmatpush.msra.mxu1 %v92_v8 }
  0x15   :  { %99 = vmatpush.msra.mxu1 %v98_v14 }
  0x17   :  { %198 = vmatpush.msrb.mxu1 %v61_v4 }
  0x19   :  { %200 = vmatpush.msrb.mxu1 %v63_v10 }
  0x7a   :  { %v33_v17 = vpop.permute.xlu0 %32 }
  0x7b   :  { %vm34_vm2 = vcmp.eq.s32.totalorder %v30_v16, %v33_v17 }
  0x7c   :  { %v224_v19 = vsel %vm34_vm2, 1.0, %v291_v18 }
  0x7d   :  { %225 = vmatmul.msk.f32.vlgmr.msra.gmra.mxu1 %vm39_vm1, %v224_v19  ;;  %v41_v20 = vsel %vm39_vm1, %v224_v19, 0 }
  0x7e   :  { %v66_v21 = vsub.f32 %v41_v20, %v41_v20 }
  0x80   :  { %127 = vmatmul.f32.vlgmr.msra.gmra.mxu2 %v66_v21  ;;  %v67_v22 = vand.u32 4294901760, %v66_v21 }
  0x82   :  { %152 = vmatmul.f32.vlgmr.msra.gmra.mxu3 %v67_v22  ;;  %v68_v23 = vsub.f32 %v66_v21, %v67_v22 }
  0x84   :  { %v69_v24 = vand.u32 4294901760, %v68_v23 }
  0x85   :  { %227 = vmatmul.msk.f32.vlgmr.msrb.gmra.mxu1 %vm39_vm1, %v224_v19 }
  0x86   :  { %70 = vmatmul.f32.vlgmr.msra.gmra.mxu0 %v69_v24 }
  0x8e   :  { %226 = vmatmul.msk.f32.vlgmr.msrb.gmra.mxu0 %vm39_vm1, %v224_v19 }
  0xfa   :  { %v102_v25 = vpop.f32.mrf.mxu1 }
 0x102   :  { %v203_v34 = vpop.f32.mrf.mxu1 }
 0x103   :  { %v71_v26 = vpop.f32.mrf.mxu0  ;;  %v128_v28 = vpop.f32.mrf.mxu2 }
 0x104   :  { %v103_v27 = vadd.f32 %v102_v25, %v71_v26 }
 0x105   :  { %v153_v30 = vpop.f32.mrf.mxu3 }
 0x106   :  { %v129_v29 = vadd.f32 %v128_v28, %v103_v27 }
 0x108   :  { %v154_v31 = vadd.f32 %v153_v30, %v129_v29 }
 0x10b   :  { %v180_v32 = vpop.f32.mrf.mxu0 }
 0x10c   :  { %v181_v33 = vadd.f32 %v180_v32, %v154_v31 }
 0x10e   :  { %v204_v35 = vadd.f32 %v203_v34, %v181_v33 }
 0x110   :  { %206 = vst [vmem:[#allocation5] sm:$0xff] %v204_v35 }
 0x111   :  { %217 = dma.vmem_to_hbm [thread:$0]  %s213_s1, 128, %s215_s20, [#allocation4]  }
 0x112   :  { %285 = dma.done.wait [#allocation4], 128  }
 0x113   :  { %286 = vsyncadd [#allocation4], 4294967168 }
 0x114   :  { %222 = vsyncpa [#allocation3], 1 }
 0x115   :  { %223 = vsyncpa [#allocation4], 1 }

</bundles_post_ra>
